<compile_context>
chip_gen: v6e
topology: v6e:2x2x1
jax: 0.10.0
libtpu: 0.0.40
codegen_flags: <defaults>
</compile_context>

<pallas_src>
import jax
import jax.numpy as jnp
from jax.experimental import pallas as pl
from jax.experimental.pallas import tpu as pltpu


# ----------------------------------------------------------------------------
# Weight rotation (plain-JAX port of the torch reference, exact semantics)
# ----------------------------------------------------------------------------
def _get_rotation_matrix(thetas):
    """thetas: [bs, g] -> rotation matrices [bs, g, 9, 9] (exact port of torch code)."""
    bs, g = thetas.shape
    t = thetas.reshape(-1)
    x = jnp.cos(t)
    y = jnp.sin(t)
    a = x - y
    b = x * y
    c = x + y
    z = jnp.zeros_like(t)
    o = jnp.ones_like(t)

    def build(rows):
        return jnp.stack([jnp.stack(r, axis=-1) for r in rows], axis=-2)

    pos = build([
        [a, 1 - a, z, z, z, z, z, z, z],
        [z, x - b, b, z, 1 - c + b, y - b, z, z, z],
        [z, z, a, z, z, 1 - a, z, z, z],
        [b, y - b, z, x - b, 1 - c + b, z, z, z, z],
        [z, z, z, z, o, z, z, z, z],
        [z, z, z, z, 1 - c + b, x - b, z, y - b, b],
        [z, z, z, 1 - a, z, z, a, z, z],
        [z, z, z, y - b, 1 - c + b, z, b, x - b, z],
        [z, z, z, z, z, z, z, 1 - a, a],
    ])
    neg = build([
        [c, z, z, 1 - c, z, z, z, z, z],
        [-b, x + b, z, b - y, 1 - a - b, z, z, z, z],
        [z, 1 - c, c, z, z, z, z, z, z],
        [z, z, z, x + b, 1 - a - b, z, -b, b - y, z],
        [z, z, z, z, o, z, z, z, z],
        [z, b - y, -b, z, 1 - a - b, x + b, z, z, z],
        [z, z, z, z, z, z, c, 1 - c, z],
        [z, z, z, z, 1 - a - b, b - y, z, x + b, -b],
        [z, z, z, z, z, 1 - c, z, z, c],
    ])
    mask = (t >= 0).astype(t.dtype)[:, None, None]
    rot = mask * pos + (1.0 - mask) * neg
    return rot.reshape(bs, g, 9, 9)


def _batch_rotate_one_channel(weights, lambdas, thetas):
    # weights: [n, Cout, Cin, 3, 3]; lambdas/thetas: [b, n]
    assert thetas.shape == lambdas.shape
    assert lambdas.shape[1] == weights.shape[0]
    b, n = thetas.shape
    _, Cout, Cin, k, _ = weights.shape
    rot = _get_rotation_matrix(thetas)                       # [b, n, 9, 9]
    rot = rot * lambdas[:, :, None, None]
    rot = jnp.transpose(rot, (0, 2, 1, 3)).reshape(b * 9, n * 9)
    wflat = jnp.transpose(weights, (0, 3, 4, 1, 2)).reshape(n * 9, Cout * Cin)
    w = rot @ wflat                                          # [b*9, Cout*Cin] (f32 x f32)
    w = w.reshape(b, 3, 3, Cout, Cin)
    w = jnp.transpose(w, (0, 3, 4, 1, 2))                    # [b, Cout, Cin, 3, 3]
    return w


def _batch_rotate_multi_channel(weights, lambdas, thetas, num_groups):
    # weights: [n, Cout, Cin, 3, 3]; lambdas/thetas: [b, >=num_groups]
    n, Cout, Cin, k, _ = weights.shape
    w = weights.reshape(n, Cout // num_groups, num_groups, Cin, k, k)
    w = jnp.transpose(w, (2, 0, 1, 3, 4, 5))                 # [G, n, Cout//G, Cin, k, k]
    pieces = []
    for idx in range(num_groups):
        pieces.append(_batch_rotate_one_channel(
            w[idx], lambdas[:, idx:idx + 1], thetas[:, idx:idx + 1]))
    return jnp.concatenate(pieces, axis=1)                   # [b, Cout, Cin, 3, 3]


# ----------------------------------------------------------------------------
# Tile-size selection
# ----------------------------------------------------------------------------
def _pick_cout_tile(Cout):
    # TN must equal Cout or be a multiple of 128 (BlockSpec last-dim rule on the weight block).
    if Cout > 256 and Cout % 256 == 0:
        return 256
    if Cout > 128 and Cout % 128 == 0:
        return 128
    return Cout


def _vmem_bytes_per_step(th, W, Cin, tn, out_itemsize):
    """Rough per-grid-step VMEM footprint (double-buffered blocks + in-kernel temporaries)."""
    Wp = W + 2
    x_blk = (th + 2) * Wp * Cin * 4            # f32 input block
    w_blk = 9 * Cin * tn * 4                   # f32 weight block (resident)
    o_blk = th * W * tn * out_itemsize         # output block
    im2col = th * W * 9 * Cin * 4              # f32 MXU operand
    acc = th * W * tn * 4                      # f32 matmul result
    return 2 * (x_blk + w_blk + o_blk) + im2col + acc


def _pick_row_tile(H, W, Cin, tn, out_itemsize, budget_bytes):
    # Valid TH: divides H, and TH*W is a multiple of 128 (lane-dense output block) or TH == H.
    valid = [d for d in range(1, H + 1)
             if H % d == 0 and (d == H or (d * W) % 128 == 0)]
    fitting = [d for d in valid
               if _vmem_bytes_per_step(d, W, Cin, tn, out_itemsize) <= budget_bytes]
    return max(fitting) if fitting else min(valid)


# ----------------------------------------------------------------------------
# Pallas kernel: per-(batch, cout-tile, row-tile) fused-K 3x3 conv
# ----------------------------------------------------------------------------
def _arc_conv_kernel(xt_ref, w_ref, out_ref):
    # xt_ref : (1, 1, TH+2, W+2, Cin)  f32 — padded input rows for this tile (incl. halo)
    # w_ref  : (1, 9*Cin, TN)          f32 — rotated weights for this (batch, cout tile)
    # out_ref: (1, TN, TH*W)           f32 — NCHW output tile (lane dim = TH*W >= 128)
    THp2, Wp, Cin = xt_ref.shape[2], xt_ref.shape[3], xt_ref.shape[4]
    TH, W = THp2 - 2, Wp - 2

    xt = xt_ref[0, 0]                                        # (TH+2, W+2, Cin) f32

    # Fused im2col: one (TH*W, 9*Cin) operand -> a single MXU matmul with K = 9*Cin
    # instead of 9 small-K matmuls.
    cols = []
    for dy in range(3):                                      # static unrolled 3x3 taps
        for dx in range(3):
            cols.append(xt[dy:dy + TH, dx:dx + W, :].reshape(TH * W, Cin))
    patches = jnp.concatenate(cols, axis=1)                  # (TH*W, 9*Cin) f32

    acc = jnp.dot(patches, w_ref[0],
                  preferred_element_type=jnp.float32)        # (TH*W, TN) f32 accumulate
    out_ref[0] = acc.T.astype(out_ref.dtype)                 # (TN, TH*W) lane-dense store


# ----------------------------------------------------------------------------
# Module wrapper
# ----------------------------------------------------------------------------
class AdaptiveRotatedConv2dMultiChannel:
    def __init__(self, in_channels, out_channels, kernel_size=3, stride=1,
                 padding=1, dilation=1, groups=1, kernel_number=1, num_groups=1,
                 key=None, row_tile=None, cout_tile=None,
                 vmem_budget_bytes=8 * 1024 * 1024):
        assert kernel_size == 3 and stride == 1 and padding == 1
        assert dilation == 1 and groups == 1
        assert out_channels % num_groups == 0
        self.in_channels = in_channels
        self.out_channels = out_channels
        self.kernel_number = kernel_number
        self.num_groups = num_groups
        self.row_tile = row_tile
        self.cout_tile = cout_tile
        self.vmem_budget_bytes = vmem_budget_bytes

        k_w, k_a, k_t = jax.random.split(key, 3)
        # nn.Parameter(kernel_number, Cout, Cin//groups, k, k), kaiming-normal(fan_out) style
        fan_out = kernel_number * (in_channels // groups) * kernel_size * kernel_size
        std = (2.0 / fan_out) ** 0.5
        self.weight = std * jax.random.normal(
            k_w, (kernel_number, out_channels, in_channels // groups,
                  kernel_size, kernel_size), jnp.float32)
        # TODO(synk): rounting_func is an external module in the original code; a deterministic
        # GAP + linear routing head (sigmoid alphas, tanh*pi angles) is synthesized here.
        self.w_alpha = 0.5 * jax.random.normal(k_a, (in_channels, num_groups), jnp.float32)
        self.w_angle = 0.5 * jax.random.normal(k_t, (in_channels, num_groups), jnp.float32)

    def routing(self, x):
        pooled = x.mean(axis=(2, 3))                          # [B, Cin]
        alphas = jax.nn.sigmoid(pooled @ self.w_alpha)        # [B, G]
        angles = jnp.pi * jnp.tanh(pooled @ self.w_angle)     # [B, G] (mixed signs)
        return alphas, angles

    def rotated_weights(self, x):
        alphas, angles = self.routing(x)
        return _batch_rotate_multi_channel(self.weight, alphas, angles,
                                           self.num_groups)  # [B, Cout, Cin, 3, 3]

    def __call__(self, x):
        B, Cin, H, W = x.shape
        assert Cin == self.in_channels
        Cout = self.out_channels

        rw = self.rotated_weights(x)                          # [B, Cout, Cin, 3, 3] f32
        # Pack rotated weights as [B, 9*Cin, Cout] (K index = (kh*3+kw)*Cin + cin).
        w_bt = jnp.transpose(rw, (0, 3, 4, 2, 1)).reshape(B, 9 * Cin, Cout)
        w_bt = w_bt.astype(jnp.float32)

        tn = self.cout_tile if self.cout_tile is not None else _pick_cout_tile(Cout)
        assert Cout % tn == 0 and (tn == Cout or tn % 128 == 0)
        th = self.row_tile if self.row_tile is not None else _pick_row_tile(
            H, W, Cin, tn, x.dtype.itemsize, self.vmem_budget_bytes)
        assert H % th == 0 and (th == H or (th * W) % 128 == 0)
        n_h = H // th
        n_co = Cout // tn

        # NHWC, zero-padded (pad=1), f32. Overlapping row tiles carry the 2 halo rows so the
        # spatial tiling is expressible with plain Blocked BlockSpecs (correct halo handling).
        # TODO(synk): fold the pad + halo gather into the kernel (pl.Element row offsets or a
        # manual DMA from the unpadded input) to remove this extra HBM pass over the input.
        x_nhwc = jnp.transpose(x, (0, 2, 3, 1)).astype(jnp.float32)
        x_pad = jnp.pad(x_nhwc, ((0, 0), (1, 1), (1, 1), (0, 0)))     # [B, H+2, W+2, Cin]
        x_tiles = jnp.stack([x_pad[:, i * th:i * th + th + 2] for i in range(n_h)],
                            axis=1)                                    # [B, n_h, th+2, W+2, Cin]

        out_flat = pl.pallas_call(
            _arc_conv_kernel,
            out_shape=jax.ShapeDtypeStruct((B, Cout, H * W), x.dtype),
            grid=(B, n_co, n_h),                               # row-tile axis innermost
            in_specs=[
                pl.BlockSpec((1, 1, th + 2, W + 2, Cin),
                             lambda b, j, h: (b, h, 0, 0, 0)),
                # Weight block index constant along the innermost (row) axis -> stays resident
                # in VMEM; re-DMA'd only once per (batch, cout tile).
                pl.BlockSpec((1, 9 * Cin, tn),
                             lambda b, j, h: (b, 0, j)),
            ],
            out_specs=pl.BlockSpec((1, tn, th * W),
                                   lambda b, j, h: (b, j, h)),
            compiler_params=pltpu.CompilerParams(
                dimension_semantics=("parallel", "parallel", "parallel"),
                vmem_limit_bytes=48 * 1024 * 1024,             # > default scoped, < v7x physical
            ),
        )(x_tiles, w_bt)

        # NCHW already; (B, Cout, H*W) -> (B, Cout, H, W) is a free contiguous reshape.
        return out_flat.reshape(B, Cout, H, W)


# ----------------------------------------------------------------------------
if __name__ == "__main__":
    key = jax.random.PRNGKey(0)
    kx, kp = jax.random.split(key)

    B, Cin, H, W = 2, 4, 16, 16
    Cout, G = 8, 2
    x = jax.random.normal(kx, (B, Cin, H, W), jnp.float32)

    # row_tile=8 -> 2 row tiles per image: exercises the halo / weight-residency tiling path.
    mod = AdaptiveRotatedConv2dMultiChannel(Cin, Cout, kernel_size=3, stride=1,
                                            padding=1, kernel_number=1,
                                            num_groups=G, key=kp, row_tile=8)
    out = jax.block_until_ready(mod(x))
    assert out.shape == (B, Cout, H, W)
    assert out.dtype == jnp.float32

    # Cross-check the Pallas conv against a pure-JAX f32 reference on the whole image.
    rw = mod.rotated_weights(x)                               # [B, Cout, Cin, 3, 3]
    w_ref = jnp.transpose(rw, (0, 3, 4, 2, 1)).reshape(B, 9, Cin, Cout).astype(jnp.float32)
    x_pad = jnp.pad(jnp.transpose(x, (0, 2, 3, 1)),
                    ((0, 0), (1, 1), (1, 1), (0, 0))).astype(jnp.float32)
    patches = jnp.stack([x_pad[:, dy:dy + H, dx:dx + W, :]
                         for dy in range(3) for dx in range(3)], axis=3)   # [B,H,W,9,Cin]
    ref = jnp.einsum('bhwtc,btco->bohw', patches, w_ref,
                     preferred_element_type=jnp.float32)
    max_err = float(jnp.max(jnp.abs(out - ref)))
    assert jnp.allclose(out, ref, rtol=1e-3, atol=1e-3), max_err

    print("KERNEL_OK")
</pallas_src>

<mosaic_0001>
module attributes {stable_mosaic.version = 11 : i64} {
  func.func @_arc_conv_kernel(%arg0: i32, %arg1: i32, %arg2: i32, %arg3: memref<1x1x10x18x4xf32, #tpu.memory_space<vmem>>, %arg4: memref<1x36x8xf32, #tpu.memory_space<vmem>>, %arg5: memref<1x8x128xf32, #tpu.memory_space<vmem>>) attributes {dimension_semantics = [#tpu.dimension_semantics<parallel>, #tpu.dimension_semantics<parallel>, #tpu.dimension_semantics<parallel>], iteration_bounds = array<i64: 2, 1, 2>, scalar_prefetch = 0 : i64, scratch_operands = 0 : i64, tpu.core_type = #tpu.core_type<tc>, window_params = [{transform_indices = @transform_0, window_bounds = array<i64: 1, 1, 10, 18, 4>}, {transform_indices = @transform_1, window_bounds = array<i64: 1, 36, 8>}, {transform_indices = @transform_2, window_bounds = array<i64: 1, 8, 128>}]} {
    %c0 = arith.constant 0 : index
    %c0_0 = arith.constant 0 : index
    %c0_1 = arith.constant 0 : index
    %c0_2 = arith.constant 0 : index
    %c0_3 = arith.constant 0 : index
    %0 = vector.load %arg3[%c0, %c0_0, %c0_1, %c0_2, %c0_3] : memref<1x1x10x18x4xf32, #tpu.memory_space<vmem>>, vector<1x1x10x18x4xf32>
    %1 = vector.shape_cast %0 : vector<1x1x10x18x4xf32> to vector<10x18x4xf32>
    %2 = vector.extract_strided_slice %1 {offsets = [0, 0, 0], sizes = [8, 16, 4], strides = [1, 1, 1]} : vector<10x18x4xf32> to vector<8x16x4xf32>
    %3 = vector.shape_cast %2 : vector<8x16x4xf32> to vector<128x4xf32>
    %4 = vector.extract_strided_slice %1 {offsets = [0, 1, 0], sizes = [8, 16, 4], strides = [1, 1, 1]} : vector<10x18x4xf32> to vector<8x16x4xf32>
    %5 = vector.shape_cast %4 : vector<8x16x4xf32> to vector<128x4xf32>
    %6 = vector.extract_strided_slice %1 {offsets = [0, 2, 0], sizes = [8, 16, 4], strides = [1, 1, 1]} : vector<10x18x4xf32> to vector<8x16x4xf32>
    %7 = vector.shape_cast %6 : vector<8x16x4xf32> to vector<128x4xf32>
    %8 = vector.extract_strided_slice %1 {offsets = [1, 0, 0], sizes = [8, 16, 4], strides = [1, 1, 1]} : vector<10x18x4xf32> to vector<8x16x4xf32>
    %9 = vector.shape_cast %8 : vector<8x16x4xf32> to vector<128x4xf32>
    %10 = vector.extract_strided_slice %1 {offsets = [1, 1, 0], sizes = [8, 16, 4], strides = [1, 1, 1]} : vector<10x18x4xf32> to vector<8x16x4xf32>
    %11 = vector.shape_cast %10 : vector<8x16x4xf32> to vector<128x4xf32>
    %12 = vector.extract_strided_slice %1 {offsets = [1, 2, 0], sizes = [8, 16, 4], strides = [1, 1, 1]} : vector<10x18x4xf32> to vector<8x16x4xf32>
    %13 = vector.shape_cast %12 : vector<8x16x4xf32> to vector<128x4xf32>
    %14 = vector.extract_strided_slice %1 {offsets = [2, 0, 0], sizes = [8, 16, 4], strides = [1, 1, 1]} : vector<10x18x4xf32> to vector<8x16x4xf32>
    %15 = vector.shape_cast %14 : vector<8x16x4xf32> to vector<128x4xf32>
    %16 = vector.extract_strided_slice %1 {offsets = [2, 1, 0], sizes = [8, 16, 4], strides = [1, 1, 1]} : vector<10x18x4xf32> to vector<8x16x4xf32>
    %17 = vector.shape_cast %16 : vector<8x16x4xf32> to vector<128x4xf32>
    %18 = vector.extract_strided_slice %1 {offsets = [2, 2, 0], sizes = [8, 16, 4], strides = [1, 1, 1]} : vector<10x18x4xf32> to vector<8x16x4xf32>
    %19 = vector.shape_cast %18 : vector<8x16x4xf32> to vector<128x4xf32>
    %20 = tpu.concatenate %3, %5, %7, %9, %11, %13, %15, %17, %19 in 1 : vector<128x4xf32>, vector<128x4xf32>, vector<128x4xf32>, vector<128x4xf32>, vector<128x4xf32>, vector<128x4xf32>, vector<128x4xf32>, vector<128x4xf32>, vector<128x4xf32> -> vector<128x36xf32>
    %c0_4 = arith.constant 0 : index
    %c0_5 = arith.constant 0 : index
    %c0_6 = arith.constant 0 : index
    %21 = vector.load %arg4[%c0_4, %c0_5, %c0_6] : memref<1x36x8xf32, #tpu.memory_space<vmem>>, vector<1x36x8xf32>
    %22 = vector.shape_cast %21 : vector<1x36x8xf32> to vector<36x8xf32>
    %cst = arith.constant dense<0.000000e+00> : vector<128x8xf32>
    %23 = tpu.matmul %20, %22, %cst {dimension_numbers = #tpu.dot_dimension_numbers<[1], [0], [0], [1], [0, 0, 1, 1], [], []>} : vector<128x36xf32>, vector<36x8xf32>, vector<128x8xf32> -> vector<128x8xf32>
    %24 = tpu.transpose %23, [1, 0] : vector<128x8xf32> -> vector<8x128xf32>
    %c0_7 = arith.constant 0 : index
    %c0_8 = arith.constant 0 : index
    %c0_9 = arith.constant 0 : index
    %25 = vector.load %arg5[%c0_7, %c0_8, %c0_9] : memref<1x8x128xf32, #tpu.memory_space<vmem>>, vector<1x8x128xf32>
    %26 = vector.shape_cast %25 : vector<1x8x128xf32> to vector<8x128xf32>
    %27 = vector.shape_cast %24 : vector<8x128xf32> to vector<1x8x128xf32>
    tpu.vector_store %arg5[%c0_7, %c0_8, %c0_9], %27 {strides = array<i32>} : memref<1x8x128xf32, #tpu.memory_space<vmem>>, vector<1x8x128xf32>,
    return
  }
  func.func @transform_0(%arg0: i32, %arg1: i32, %arg2: i32) -> (i32, i32, i32, i32, i32) {
    %c0_i32 = arith.constant 0 : i32
    %c0_i32_0 = arith.constant 0 : i32
    %c0_i32_1 = arith.constant 0 : i32
    %c0_i32_2 = arith.constant 0 : i32
    return %arg0, %arg2, %c0_i32, %c0_i32_0, %c0_i32_1 : i32, i32, i32, i32, i32
  }
  func.func @transform_1(%arg0: i32, %arg1: i32, %arg2: i32) -> (i32, i32, i32) {
    %c0_i32 = arith.constant 0 : i32
    %c0_i32_0 = arith.constant 0 : i32
    return %arg0, %c0_i32, %arg1 : i32, i32, i32
  }
  func.func @transform_2(%arg0: i32, %arg1: i32, %arg2: i32) -> (i32, i32, i32) {
    %c0_i32 = arith.constant 0 : i32
    return %arg0, %arg1, %arg2 : i32, i32, i32
  }
}

</mosaic_0001>

<bundles_post_ra>
// kernel: tpu_custom_call.1
= control target key start
LH: loop header
LB: loop body
LE: loop exit
PB: predicated region body
PF: predicated region fallthrough
CT: control target
= control target key end

     0   :  { %7 = vsyncpa [#allocation3], 0  ;;  %s2229_s0 = inlined_call_operand.vmem [shape: f32[2,2,10,18,4], index: 0, kind: input, shape index: {}]   ;;  %s2230_s1 = inlined_call_operand.vmem [shape: f32[2,36,8], index: 1, kind: input, shape index: {}]   ;;  %s2231_s2 = inlined_call_operand.hbm [shape: f32[2,8,256], index: 2, kind: output, shape index: {}]  }
   0x1   :  { %9 = vsyncpa [#allocation3 + $0x1], 0  ;;  %s1545_s9 = smov 0   ;;  %s1547_s10 = smov 0  }
   0x2   :  { %s1549_s11 = smov 0   ;;  %s1551_s12 = smov 0  }
   0x3   :  { %s1553_s13 = smov 0   ;;  %s1555_s14 = smov 0  }
   0x4   :  { %s1557_s15 = smov 0   ;;  %s1559_s16 = smov 0  }
   0x5 LB: > { %s1250_s17 = sadd.s32 4294967295, %s1519_s16   ;;  %s1251_s18 = sadd.s32 4294967294, %s1519_s16   ;;  %s1519_s16 = sphi %s1559_s16, %s15_s16   ;;  %s1515_s15 = sphi %s1557_s15, %s2240_s15   ;;  %s1511_s14 = sphi %s1555_s14, %s2239_s14   ;;  %s1507_s13 = sphi %s1553_s13, %s2238_s13   ;;  %s1503_s12 = sphi %s1551_s12, %s2237_s12   ;;  %s1499_s11 = sphi %s1549_s11, %s2236_s11   ;;  %s1495_s10 = sphi %s1547_s10, %s2235_s10   ;;  %s1491_s9 = sphi %s1545_s9, %s2234_s9  }
   0x6   : > { %s27_s19 = sadd.s32 1, %s1511_s14  ;;  %s34_s20 = sadd.s32 1, %s1515_s15 }
   0x7   : > { %p28_p0 = scmp.ge.s32.totalorder %s27_s19, 2  ;;  %p111_p1 = scmp.ne.s32.totalorder %s1499_s11, %s1495_s10 }
   0x8   : > { %p112_p2 = scmp.eq.s32.totalorder %s1250_s17, 3  ;;  %p117_p5 = scmp.ne.s32.totalorder %s1495_s10, %s1491_s9 }
   0x9   : > { %s2242_s19 = smov (%p28_p0, %s27_s19), 0  ;;  %s2244_s20 = smov (!%p28_p0, %s34_s20), %s1515_s15 }
   0xa   : > { %s97_s21 = ssub.s32 %s1511_s14, %s2242_s19  ;;  %p1596_p3 = por %p112_p2, %p111_p1 }
   0xb   : > { %p36_p4 = scmp.ge.s32.totalorder %s2244_s20, 2  ;;  %p118_p6 = scmp.eq.s32.totalorder %s1251_s18, 3 }
   0xc   : > { %p1254_p7 = scmp.ge.s32.totalorder %s1519_s16, 1  ;;  %p159_p9 = scmp.lt.s32.totalorder %s1519_s16, 5 }
   0xd   : > { %s2246_s20 = smov (%p36_p4, %s2244_s20), 0  ;;  %p1605_p8 = por %p118_p6, %p117_p5 }
   0xe   : > { %s94_s24 = ssub.s32 %s1515_s15, %s2246_s20  ;;  %s101_s25 = sadd.s32 1, %s1499_s11 }
   0xf   : > { %s98_s26 = sor.u32 %s97_s21, %s94_s24  ;;  %p160_p10 = pnand %p1254_p7, %p159_p9 }
  0x10   : > { %p99_p11 = scmp.eq.s32.totalorder %s98_s26, 0  ;;  %p193_p12 = scmp.lt.s32.totalorder (!%p160_p10), %s1507_s13, 1 }
  0x11   : > { %163 = sbr.rel (%p160_p10) target bundleno = 677 (0x2a5), region = 28  ;;  %p195_p13 = scmp.lt.s32.totalorder (!%p160_p10), %s1503_s12, 1 }
  0x12   : > { %s1614_s27 = scalar_select %p99_p11, %s1499_s11, %s101_s25  }
  0x13   : > { %s1521_s17 = smov (!%p160_p10), 12   ;;  %s1522_s18 = smov (!%p160_p10), 8  }
  0x14   : > { %s1523_s21 = smov (!%p160_p10), 4   ;;  %s1524_s24 = smov (!%p160_p10), 16  }
  0x15   : > { %s1525_s25 = smov (!%p160_p10), 20   ;;  %s190_s6 = sand.u32 (!%p160_p10), 1, %s1495_s10  }
  0x16   : > { %s1619_s28 = scalar_select %p193_p12, %s1507_s13, 1  ;;  %vm305_vm0 = vcmask 1045504   ;;  %vm264_vm1 = vcmask 1046528   ;;  %vm946_vm2 = vcmask 1043456   ;;  %vm756_vm3 = vcmask 31744  }
  0x17   : > { %s196_s29 = scalar_select %p195_p13, %s1503_s12, 1  ;;  %vm773_vm4 = vcmask 64512   ;;  %vm790_vm5 = vcmask 97280   ;;  %vm807_vm6 = vcmask 130048   ;;  %vm824_vm7 = vcmask 162816  }
  0x18   : > { %s1346_s30 = smul.u32 60, %s1619_s28  ;;  %vm841_vm8 = vcmask 195584   ;;  %vm858_vm9 = vcmask 228352   ;;  %vm875_vm10 = vcmask 261120   ;;  %vm897_vm11 = vcmask 293888   ;;  %s1255_s7 = sshll.u32 %s190_s6, 3 }
  0x19   : > { %s1345_s3 = smul.u32 30, %s196_s29  ;;  %s1526_s29 = smov 24  }
  0x1a   : > { %s1347_s26 = smul.u32 40, %s1619_s28  ;;  %s1527_s28 = smov 28  }
  0x1b   : > { %s199_s4 = sadd.s32 %s1346_s30, %s1345_s3  ;;  %s1129_s30 = scalar_lea.sflag [#allocation3], %s190_s6 }
  0x1c   : > { %s1256_s5 = sshll.u32 %s199_s4, 3  ;;  %s1685_s4 = scalar_lea.vmem %s2230_s1, %s1347_s26 }
  0x1d   : > { %s1626_s8 = scalar_lea.vmem %s2229_s0, %s1256_s5  ;;  %v896_v30 = vld [vmem:[%s1685_s4 + $0x20] sm:$0xf]  ;;  %v895_v31 = vld [vmem:[%s1685_s4 + $0x18] sm:$0xff]  ;;  %v894_v33 = vld [vmem:[%s1685_s4 + $0x10] sm:$0xff]  ;;  %s1528_s5 = smov 32  }
  0x1e   : > { %v1629_v0 = vld [vmem:[%s1626_s8 + $0x20] sm:$0xff]  ;;  %v1632_v1 = vld [vmem:[%s1626_s8 + $0x18] sm:$0xff]  ;;  %v1642_v3 = vld [vmem:[%s1626_s8 + $0x8] sm:$0xff]  ;;  %1301 = vmatprep.subr.msk.mxu0 %vm946_vm2, %v896_v30  ;;  %1335 = vmatprep.subr.msk.mxu1 %vm946_vm2, %v896_v30 }
  0x1f   : > { %v1635_v2 = vld [vmem:[%s1626_s8] sm:$0xff]  ;;  %470 = vrot.lane.b32.xlu1 %v1629_v0, %s1521_s17  ;;  %468 = vrot.lane.b32.xlu0 %v1632_v1, %s1521_s17  ;;  %v212_v6 = vld [vmem:[%s1626_s8 + $0x10] sm:$0x3]  ;;  %v307_v7 = vrot.slane %v1642_v3, 2  ;;  %v266_v8 = vrot.slane %v1642_v3, 1  ;;  %v270_v15 = vrot.slane %v1632_v1, 1 }
  0x20   : > { %v306_v4 = vrot.slane %v1635_v2, 2  ;;  %v265_v5 = vrot.slane %v1635_v2, 1  ;;  %v309_v9 = vrot.slane %v212_v6, 2  ;;  %v268_v10 = vrot.slane %v212_v6, 1  ;;  %v215_v17 = vld [vmem:[%s1626_s8 + $0x28] sm:$0x3]  ;;  %1302 = vmatpush3.msk.msra.mxu0 %vm946_vm2, %v896_v30  ;;  %1340 = vmatpush3.msk.msra.mxu1 %vm946_vm2, %v896_v30 }
  0x21   : > { %v271_v16 = vrot.slane %v1629_v0, 1  ;;  %v311_v19 = vrot.slane %v1632_v1, 2  ;;  %v312_v20 = vrot.slane %v1629_v0, 2  ;;  %v273_v21 = vrot.slane %v215_v17, 1  ;;  %v1672_v25 = vld [vmem:[%s1626_s8 + $0x30] sm:$0xff]  ;;  %v1676_v27 = vld [vmem:[%s1626_s8 + $0x38] sm:$0xff]  ;;  %1303 = vmatprep.subr.mxu0 %v895_v31  ;;  %1336 = vmatprep.subr.mxu1 %v895_v31 }
  0x22   : > { %v308_v11 = vsel %vm305_vm0, %v306_v4, %v307_v7  ;;  %v267_v12 = vsel %vm264_vm1, %v265_v5, %v266_v8  ;;  %v310_v13 = vsel %vm305_vm0, %v307_v7, %v309_v9  ;;  %v269_v14 = vsel %vm264_vm1, %v266_v8, %v268_v10  ;;  %v218_v34 = vld [vmem:[%s1626_s8 + $0x40] sm:$0x3]  ;;  %1304 = vmatpush3.msra.mxu0 %v895_v31  ;;  %v893_v35 = vld [vmem:[%s1685_s4 + $0x8] sm:$0xff]  ;;  %v1722_v45 = vld [vmem:[%s1626_s8 + $0x50] sm:$0xff] }
  0x23   : > { %420 = vrot.lane.b32.xlu1 %v308_v11, %s1522_s18  ;;  %372 = vrot.lane.b32.xlu0 %v267_v12, %s1523_s21  ;;  %v272_v18 = vsel %vm264_vm1, %v270_v15, %v271_v16  ;;  %v313_v22 = vsel %vm305_vm0, %v311_v19, %v312_v20  ;;  %v274_v23 = vsel %vm264_vm1, %v271_v16, %v273_v21  ;;  %v314_v24 = vrot.slane %v215_v17, 2  ;;  %v892_v39 = vld [vmem:[%s1685_s4] sm:$0xff]  ;;  %v1719_v44 = vld [vmem:[%s1626_s8 + $0x48] sm:$0xff] }
  0x24   : > { %v275_v28 = vrot.slane %v1672_v25, 1  ;;  %v276_v29 = vrot.slane %v1676_v27, 1  ;;  %1341 = vmatpush3.msra.mxu1 %v895_v31  ;;  %1305 = vmatprep.subr.mxu0 %v894_v33  ;;  %v316_v36 = vrot.slane %v1672_v25, 2  ;;  %v317_v37 = vrot.slane %v1676_v27, 2  ;;  %v221_v49 = vld [vmem:[%s1626_s8 + $0x58] sm:$0x3] }
  0x25   : > { %v315_v26 = vsel %vm305_vm0, %v312_v20, %v314_v24  ;;  %1337 = vmatprep.subr.mxu1 %v894_v33  ;;  %v278_v38 = vrot.slane %v218_v34, 1  ;;  %1306 = vmatpush3.msra.mxu0 %v894_v33  ;;  %v319_v42 = vrot.slane %v218_v34, 2  ;;  %v280_v46 = vrot.slane %v1719_v44, 1  ;;  %v1754_v57 = vld [vmem:[%s1626_s8 + $0x60] sm:$0xff]  ;;  %v1757_v58 = vld [vmem:[%s1626_s8 + $0x68] sm:$0xff]  ;;  %v1791_v12 = vld [vmem:[%s1626_s8 + $0x78] sm:$0xff] }
  0x26   : > { %v277_v32 = vsel %vm264_vm1, %v275_v28, %v276_v29  ;;  %1342 = vmatpush3.msra.mxu1 %v894_v33  ;;  %1307 = vmatprep.subr.mxu0 %v893_v35  ;;  %v318_v40 = vsel %vm305_vm0, %v316_v36, %v317_v37  ;;  %v281_v47 = vrot.slane %v1722_v45, 1  ;;  %v321_v50 = vrot.slane %v1719_v44, 2  ;;  %v224_v62 = vld [vmem:[%s1626_s8 + $0x70] sm:$0x3]  ;;  %v1794_v15 = vld [vmem:[%s1626_s8 + $0x80] sm:$0xff] }
  0x27   : > { %422 = vrot.lane.b32.xlu1 %v310_v13, %s1522_s18  ;;  %374 = vrot.lane.b32.xlu0 %v269_v14, %s1523_s21  ;;  %v279_v41 = vsel %vm264_vm1, %v276_v29, %v278_v38  ;;  %v320_v43 = vsel %vm305_vm0, %v317_v37, %v319_v42  ;;  %v322_v51 = vrot.slane %v1722_v45, 2  ;;  %v283_v52 = vrot.slane %v221_v49, 1 }
  0x28   : > { %1338 = vmatprep.subr.mxu1 %v893_v35  ;;  %1308 = vmatpush3.msra.mxu0 %v893_v35  ;;  %v282_v48 = vsel %vm264_vm1, %v280_v46, %v281_v47  ;;  %v324_v55 = vrot.slane %v221_v49, 2  ;;  %v285_v59 = vrot.slane %v1754_v57, 1  ;;  %v286_v60 = vrot.slane %v1757_v58, 1 }
  0x29   : > { %1343 = vmatpush3.msra.mxu1 %v893_v35  ;;  %1309 = vmatprep.subr.mxu0 %v892_v39  ;;  %v323_v53 = vsel %vm305_vm0, %v321_v50, %v322_v51  ;;  %v284_v54 = vsel %vm264_vm1, %v281_v47, %v283_v52  ;;  %v326_v63 = vrot.slane %v1754_v57, 2  ;;  %v327_v4 = vrot.slane %v1757_v58, 2  ;;  %v1841_v47 = vld [vmem:[%s1626_s8 + $0x90] sm:$0xff]  ;;  %v1849_v50 = vld [vmem:[%s1626_s8 + $0x98] sm:$0xff] }
  0x2a   : > { %1339 = vmatprep.subr.mxu1 %v892_v39  ;;  %1310 = vmatpush3.msra.mxu0 %v892_v39  ;;  %v325_v56 = vsel %vm305_vm0, %v322_v51, %v324_v55  ;;  %v287_v61 = vsel %vm264_vm1, %v285_v59, %v286_v60  ;;  %v288_v5 = vrot.slane %v224_v62, 1  ;;  %v329_v8 = vrot.slane %v224_v62, 2 }
  0x2b   : > { %376 = vrot.lane.b32.xlu1 %v272_v18, %s1523_s21  ;;  %516 = vrot.lane.b32.xlu0 %v272_v18, %s1524_s24  ;;  %v328_v6 = vsel %vm305_vm0, %v326_v63, %v327_v4  ;;  %v290_v16 = vrot.slane %v1791_v12, 1  ;;  %v291_v17 = vrot.slane %v1794_v15, 1  ;;  %v331_v24 = vrot.slane %v1791_v12, 2 }
  0x2c   : > { %1344 = vmatpush3.msra.mxu1 %v892_v39  ;;  %v289_v7 = vsel %vm264_vm1, %v286_v60, %v288_v5  ;;  %v330_v9 = vsel %vm305_vm0, %v327_v4, %v329_v8  ;;  %v295_v55 = vrot.slane %v1841_v47, 1 }
  0x2d   : > { %v292_v20 = vsel %vm264_vm1, %v290_v16, %v291_v17 }
  0x2f   : > { %564 = vrot.lane.b32.xlu1 %v313_v22, %s1525_s25  ;;  %518 = vrot.lane.b32.xlu0 %v274_v23, %s1524_s24 }
  0x33   : > { %424 = vrot.lane.b32.xlu1 %v313_v22, %s1522_s18  ;;  %378 = vrot.lane.b32.xlu0 %v274_v23, %s1523_s21  ;;  %v227_v23 = vld [vmem:[%s1626_s8 + $0x88] sm:$0x3] }
  0x34   : > { %v293_v28 = vrot.slane %v227_v23, 1  ;;  %v334_v35 = vrot.slane %v227_v23, 2 }
  0x37   : > { %612 = vrot.lane.b32.xlu1 %v1672_v25, %s1526_s29  ;;  %566 = vrot.lane.b32.xlu0 %v315_v26, %s1525_s25 }
  0x3b   : > { %472 = vrot.lane.b32.xlu1 %v1672_v25, %s1521_s17  ;;  %426 = vrot.lane.b32.xlu0 %v315_v26, %s1522_s18  ;;  %v332_v26 = vrot.slane %v1794_v15, 2 }
  0x3d   : > { %v333_v31 = vsel %vm305_vm0, %v331_v24, %v332_v26  ;;  %v335_v38 = vsel %vm305_vm0, %v332_v26, %v334_v35 }
  0x3f   : > { %660 = vrot.lane.b32.xlu1 %v277_v32, %s1527_s28  ;;  %614 = vrot.lane.b32.xlu0 %v1676_v27, %s1526_s29 }
  0x43   : > { %520 = vrot.lane.b32.xlu1 %v277_v32, %s1524_s24  ;;  %474 = vrot.lane.b32.xlu0 %v1676_v27, %s1521_s17 }
  0x47   : > { %708 = vrot.lane.b32.xlu1 %v318_v40, %s1528_s5  ;;  %662 = vrot.lane.b32.xlu0 %v279_v41, %s1527_s28 }
  0x4b   : > { %522 = vrot.lane.b32.xlu1 %v279_v41, %s1524_s24  ;;  %380 = vrot.lane.b32.xlu0 %v277_v32, %s1523_s21  ;;  %v294_v32 = vsel %vm264_vm1, %v291_v17, %v293_v28 }
  0x4f   : > { %710 = vrot.lane.b32.xlu1 %v320_v43, %s1528_s5  ;;  %568 = vrot.lane.b32.xlu0 %v318_v40, %s1525_s25 }
  0x53   : > { %428 = vrot.lane.b32.xlu1 %v318_v40, %s1522_s18  ;;  %382 = vrot.lane.b32.xlu0 %v279_v41, %s1523_s21 }
  0x57   : > { %616 = vrot.lane.b32.xlu1 %v1719_v44, %s1526_s29  ;;  %570 = vrot.lane.b32.xlu0 %v320_v43, %s1525_s25 }
  0x5b   : > { %476 = vrot.lane.b32.xlu1 %v1719_v44, %s1521_s17  ;;  %430 = vrot.lane.b32.xlu0 %v320_v43, %s1522_s18 }
  0x5f   : > { %664 = vrot.lane.b32.xlu1 %v282_v48, %s1527_s28  ;;  %618 = vrot.lane.b32.xlu0 %v1722_v45, %s1526_s29 }
  0x63   : > { %524 = vrot.lane.b32.xlu1 %v282_v48, %s1524_s24  ;;  %478 = vrot.lane.b32.xlu0 %v1722_v45, %s1521_s17 }
  0x67   : > { %712 = vrot.lane.b32.xlu1 %v323_v53, %s1528_s5  ;;  %666 = vrot.lane.b32.xlu0 %v284_v54, %s1527_s28 }
  0x6b   : > { %526 = vrot.lane.b32.xlu1 %v284_v54, %s1524_s24  ;;  %384 = vrot.lane.b32.xlu0 %v282_v48, %s1523_s21 }
  0x6f   : > { %714 = vrot.lane.b32.xlu1 %v325_v56, %s1528_s5  ;;  %572 = vrot.lane.b32.xlu0 %v323_v53, %s1525_s25 }
  0x73   : > { %432 = vrot.lane.b32.xlu1 %v323_v53, %s1522_s18  ;;  %386 = vrot.lane.b32.xlu0 %v284_v54, %s1523_s21 }
  0x77   : > { %620 = vrot.lane.b32.xlu1 %v1754_v57, %s1526_s29  ;;  %574 = vrot.lane.b32.xlu0 %v325_v56, %s1525_s25 }
  0x7b   : > { %480 = vrot.lane.b32.xlu1 %v1754_v57, %s1521_s17  ;;  %434 = vrot.lane.b32.xlu0 %v325_v56, %s1522_s18  ;;  %v296_v56 = vrot.slane %v1849_v50, 1 }
  0x7d   : > { %v297_v63 = vsel %vm264_vm1, %v295_v55, %v296_v56 }
  0x7f   : > { %668 = vrot.lane.b32.xlu1 %v287_v61, %s1527_s28  ;;  %622 = vrot.lane.b32.xlu0 %v1757_v58, %s1526_s29 }
  0x83   : > { %528 = vrot.lane.b32.xlu1 %v287_v61, %s1524_s24  ;;  %482 = vrot.lane.b32.xlu0 %v1757_v58, %s1521_s17 }
  0x87   : > { %716 = vrot.lane.b32.xlu1 %v328_v6, %s1528_s5  ;;  %670 = vrot.lane.b32.xlu0 %v289_v7, %s1527_s28 }
  0x8b   : > { %530 = vrot.lane.b32.xlu1 %v289_v7, %s1524_s24  ;;  %388 = vrot.lane.b32.xlu0 %v287_v61, %s1523_s21 }
  0x8f   : > { %718 = vrot.lane.b32.xlu1 %v330_v9, %s1528_s5  ;;  %576 = vrot.lane.b32.xlu0 %v328_v6, %s1525_s25 }
  0x91   : > { %v1786_v10 = vpop.permute.xlu1 %470  ;;  %v469_v11 = vpop.permute.xlu0 %468 }
  0x93   : > { %436 = vrot.lane.b32.xlu1 %v328_v6, %s1522_s18  ;;  %390 = vrot.lane.b32.xlu0 %v289_v7, %s1523_s21  ;;  %v230_v7 = vld [vmem:[%s1626_s8 + $0xa0] sm:$0x3] }
  0x94   : > { %v339_v26 = vrot.slane %v230_v7, 2 }
  0x95   : > { %v421_v13 = vpop.permute.xlu1 %420  ;;  %v373_v14 = vpop.permute.xlu0 %372 }
  0x96   : > { %v757_v41 = vsel %vm756_vm3, %v1635_v2, %v373_v14  ;;  %v298_v14 = vrot.slane %v230_v7, 1 }
  0x97   : > { %624 = vrot.lane.b32.xlu1 %v1791_v12, %s1526_s29  ;;  %578 = vrot.lane.b32.xlu0 %v330_v9, %s1525_s25  ;;  %v774_v46 = vsel %vm773_vm4, %v757_v41, %v421_v13  ;;  %v336_v13 = vrot.slane %v1841_v47, 2  ;;  %v1916_v41 = vld [vmem:[%s1626_s8 + $0xa8] sm:$0xff] }
  0x98   : > { %v791_v2 = vsel %vm790_vm5, %v774_v46, %v469_v11 }
  0x99   : > { %v1801_v18 = vpop.permute.xlu1 %422  ;;  %v375_v19 = vpop.permute.xlu0 %374 }
  0x9a   : > { %v758_v52 = vsel %vm756_vm3, %v1642_v3, %v375_v19 }
  0x9b   : > { %484 = vrot.lane.b32.xlu1 %v1791_v12, %s1521_s17  ;;  %438 = vrot.lane.b32.xlu0 %v330_v9, %s1522_s18  ;;  %v775_v3 = vsel %vm773_vm4, %v758_v52, %v1801_v18 }
  0x9c   : > { %v792_v4 = vsel %vm790_vm5, %v775_v3, %v1786_v10  ;;  %v337_v10 = vrot.slane %v1849_v50, 2 }
  0x9d   : > { %v1807_v21 = vpop.permute.xlu1 %376  ;;  %v517_v22 = vpop.permute.xlu0 %516 }
  0x9e   : > { %v808_v51 = vsel %vm807_vm6, %v791_v2, %v517_v22  ;;  %v299_v22 = vsel %vm264_vm1, %v296_v56, %v298_v14  ;;  %v1925_v2 = vld [vmem:[%s1626_s8 + $0xb0] sm:$0xff] }
  0x9f   : > { %672 = vrot.lane.b32.xlu1 %v292_v20, %s1527_s28  ;;  %626 = vrot.lane.b32.xlu0 %v1794_v15, %s1526_s29 }
  0xa1   : > { %v565_v29 = vpop.permute.xlu1 %564  ;;  %v519_v30 = vpop.permute.xlu0 %518 }
  0xa2   : > { %v825_v53 = vsel %vm824_vm7, %v808_v51, %v565_v29  ;;  %v809_v8 = vsel %vm807_vm6, %v792_v4, %v519_v30  ;;  %v340_v30 = vsel %vm305_vm0, %v337_v10, %v339_v26  ;;  %v301_v51 = vrot.slane %v1925_v2, 1 }
  0xa3   : > { %532 = vrot.lane.b32.xlu1 %v292_v20, %s1524_s24  ;;  %486 = vrot.lane.b32.xlu0 %v1794_v15, %s1521_s17 }
  0xa5   : > { %v1820_v33 = vpop.permute.xlu1 %424  ;;  %v1822_v34 = vpop.permute.xlu0 %378 }
  0xa6   : > { %v760_v55 = vsel %vm756_vm3, %v1629_v0, %v1822_v34  ;;  %v233_v0 = vld [vmem:[%s1626_s8 + $0xb8] sm:$0x3] }
  0xa7   : > { %720 = vrot.lane.b32.xlu1 %v333_v31, %s1528_s5  ;;  %674 = vrot.lane.b32.xlu0 %v294_v32, %s1527_s28  ;;  %v303_v4 = vrot.slane %v233_v0, 1 }
  0xa9   : > { %v613_v36 = vpop.permute.xlu1 %612  ;;  %v567_v37 = vpop.permute.xlu0 %566 }
  0xaa   : > { %v842_v54 = vsel %vm841_vm8, %v825_v53, %v613_v36  ;;  %v826_v9 = vsel %vm824_vm7, %v809_v8, %v567_v37  ;;  %v759_v37 = vsel %vm756_vm3, %v1632_v1, %v1807_v21 }
  0xab   : > { %534 = vrot.lane.b32.xlu1 %v294_v32, %s1524_s24  ;;  %392 = vrot.lane.b32.xlu0 %v292_v20, %s1523_s21  ;;  %v338_v20 = vsel %vm305_vm0, %v336_v13, %v337_v10  ;;  %v304_v13 = vsel %vm264_vm1, %v301_v51, %v303_v4 }
  0xad   : > { %v1829_v39 = vpop.permute.xlu1 %472  ;;  %v1831_v40 = vpop.permute.xlu0 %426 }
  0xae   : > { %v777_v56 = vsel %vm773_vm4, %v760_v55, %v1831_v40 }
  0xaf   : > { %722 = vrot.lane.b32.xlu1 %v335_v38, %s1528_s5  ;;  %580 = vrot.lane.b32.xlu0 %v333_v31, %s1525_s25 }
  0xb1   : > { %v661_v42 = vpop.permute.xlu1 %660  ;;  %v615_v43 = vpop.permute.xlu0 %614 }
  0xb2   : > { %v859_v59 = vsel %vm858_vm9, %v842_v54, %v661_v42  ;;  %v843_v11 = vsel %vm841_vm8, %v826_v9, %v615_v43 }
  0xb3   : > { %440 = vrot.lane.b32.xlu1 %v333_v31, %s1522_s18  ;;  %394 = vrot.lane.b32.xlu0 %v294_v32, %s1523_s21 }
  0xb5   : > { %v1844_v48 = vpop.permute.xlu1 %520  ;;  %v1846_v49 = vpop.permute.xlu0 %474 }
  0xb7   : > { %628 = vrot.lane.b32.xlu1 %v1841_v47, %s1526_s29  ;;  %582 = vrot.lane.b32.xlu0 %v335_v38, %s1525_s25 }
  0xb9   : > { %v709_v60 = vpop.permute.xlu1 %708  ;;  %v663_v61 = vpop.permute.xlu0 %662 }
  0xba   : > { %v876_v62 = vsel %vm875_vm10, %v859_v59, %v709_v60  ;;  %v860_v16 = vsel %vm858_vm9, %v843_v11, %v663_v61  ;;  %v794_v60 = vsel %vm790_vm5, %v777_v56, %v1846_v49  ;;  %v342_v49 = vrot.slane %v1925_v2, 2  ;;  %v236_v56 = vld [vmem:[%s1626_s8 + $0xd0] sm:$0x3] }
  0xbb   : > { %488 = vrot.lane.b32.xlu1 %v1841_v47, %s1521_s17  ;;  %442 = vrot.lane.b32.xlu0 %v335_v38, %s1522_s18  ;;  %v776_v38 = vsel %vm773_vm4, %v759_v37, %v1820_v33 }
  0xbc   : > { %1311 = vmatprep.mubr.msk.f32.mxu0 %vm897_vm11, %v876_v62  ;;  %v793_v42 = vsel %vm790_vm5, %v776_v38, %v1829_v39  ;;  %v300_v39 = vrot.slane %v1916_v41, 1 }
  0xbd   : > { %v1872_v5 = vpop.permute.xlu1 %522  ;;  %v1874_v6 = vpop.permute.xlu0 %380  ;;  %v810_v1 = vsel %vm807_vm6, %v793_v42, %v1844_v48  ;;  %v235_v42 = vld [vmem:[%s1626_s8 + $0xc8] sm:$0xff] }
  0xbe   : > { %v302_v59 = vsel %vm264_vm1, %v300_v39, %v301_v51  ;;  %v811_v34 = vsel %vm807_vm6, %v794_v60, %v1872_v5  ;;  %v355_v60 = vrot.slane %v235_v42, 2 }
  0xbf   : > { %676 = vrot.lane.b32.xlu1 %v297_v63, %s1527_s28  ;;  %630 = vrot.lane.b32.xlu0 %v1849_v50, %s1526_s29 }
  0xc1   : > { %v711_v17 = vpop.permute.xlu1 %710  ;;  %v569_v18 = vpop.permute.xlu0 %568 }
  0xc2   : > { %v877_v19 = vsel %vm875_vm10, %v860_v16, %v711_v17  ;;  %v827_v21 = vsel %vm824_vm7, %v810_v1, %v569_v18  ;;  %v344_v16 = vrot.slane %v233_v0, 2  ;;  %v352_v0 = vrot.slane %v236_v56, 1 }
  0xc3   : > { %536 = vrot.lane.b32.xlu1 %v297_v63, %s1524_s24  ;;  %490 = vrot.lane.b32.xlu0 %v1849_v50, %s1521_s17 }
  0xc4   : > { %1312 = vmatmul.mubr.msk.f32.vlgmr.msra.gmra.mxu0 %vm897_vm11, %v877_v19  ;;  %v345_v19 = vsel %vm305_vm0, %v342_v49, %v344_v16  ;;  %v238_v16 = vld [vmem:[%s1626_s8 + $0xe0] sm:$0xff] }
  0xc5   : > { %v1893_v23 = vpop.permute.xlu1 %428  ;;  %v1895_v24 = vpop.permute.xlu0 %382 }
  0xc7   : > { %724 = vrot.lane.b32.xlu1 %v338_v20, %s1528_s5  ;;  %678 = vrot.lane.b32.xlu0 %v299_v22, %s1527_s28 }
  0xc9   : > { %v617_v28 = vpop.permute.xlu1 %616  ;;  %v571_v29 = vpop.permute.xlu0 %570 }
  0xca   : > { %v844_v33 = vsel %vm841_vm8, %v827_v21, %v617_v28  ;;  %v828_v62 = vsel %vm824_vm7, %v811_v34, %v571_v29  ;;  %v761_v29 = vsel %vm756_vm3, %v1672_v25, %v1874_v6  ;;  %v350_v21 = vrot.slane %v235_v42, 1 }
  0xcb   : > { %538 = vrot.lane.b32.xlu1 %v299_v22, %s1524_s24  ;;  %396 = vrot.lane.b32.xlu0 %v297_v63, %s1523_s21  ;;  %v341_v63 = vrot.slane %v1916_v41, 2 }
  0xcd   : > { %v1902_v31 = vpop.permute.xlu1 %476  ;;  %v1904_v32 = vpop.permute.xlu0 %430  ;;  %v343_v11 = vsel %vm305_vm0, %v341_v63, %v342_v49  ;;  %v353_v63 = vsel %vm264_vm1, %v350_v21, %v352_v0 }
  0xcf   : > { %726 = vrot.lane.b32.xlu1 %v340_v30, %s1528_s5  ;;  %584 = vrot.lane.b32.xlu0 %v338_v20, %s1525_s25 }
  0xd1   : > { %v665_v35 = vpop.permute.xlu1 %664  ;;  %v619_v36 = vpop.permute.xlu0 %618 }
  0xd2   : > { %v861_v52 = vsel %vm858_vm9, %v844_v33, %v665_v35  ;;  %v845_v40 = vsel %vm841_vm8, %v828_v62, %v619_v36  ;;  %v234_v35 = vld [vmem:[%s1626_s8 + $0xc0] sm:$0xff] }
  0xd3   : > { %444 = vrot.lane.b32.xlu1 %v338_v20, %s1522_s18  ;;  %398 = vrot.lane.b32.xlu0 %v299_v22, %s1523_s21 }
  0xd5   : > { %v1920_v43 = vpop.permute.xlu1 %524  ;;  %v1922_v46 = vpop.permute.xlu0 %478 }
  0xd7   : > { %632 = vrot.lane.b32.xlu1 %v1916_v41, %s1526_s29  ;;  %586 = vrot.lane.b32.xlu0 %v340_v30, %s1525_s25 }
  0xd9   : > { %v713_v53 = vpop.permute.xlu1 %712  ;;  %v667_v54 = vpop.permute.xlu0 %666 }
  0xda   : > { %v878_v48 = vsel %vm875_vm10, %v861_v52, %v713_v53  ;;  %v862_v7 = vsel %vm858_vm9, %v845_v40, %v667_v54 }
  0xdb   : > { %492 = vrot.lane.b32.xlu1 %v1916_v41, %s1521_s17  ;;  %446 = vrot.lane.b32.xlu0 %v340_v30, %s1522_s18  ;;  %v778_v30 = vsel %vm773_vm4, %v761_v29, %v1893_v23  ;;  %v349_v23 = vrot.slane %v234_v35, 1 }
  0xdc   : > { %1314 = vmatprep.mubr.msk.f32.mxu0 %vm897_vm11, %v878_v48  ;;  %v795_v36 = vsel %vm790_vm5, %v778_v30, %v1902_v31 }
  0xdd   : > { %v1950_v61 = vpop.permute.xlu1 %526  ;;  %v1952_v3 = vpop.permute.xlu0 %384  ;;  %v812_v1 = vsel %vm807_vm6, %v795_v36, %v1920_v43  ;;  %v762_v43 = vsel %vm756_vm3, %v1676_v27, %v1895_v24  ;;  %v351_v53 = vsel %vm264_vm1, %v349_v23, %v350_v21  ;;  %v368_v36 = vrot.slane %v238_v16, 2 }
  0xde   : > { %v779_v52 = vsel %vm773_vm4, %v762_v43, %v1904_v32 }
  0xdf   : > { %680 = vrot.lane.b32.xlu1 %v302_v59, %s1527_s28  ;;  %634 = vrot.lane.b32.xlu0 %v1925_v2, %s1526_s29  ;;  %v796_v54 = vsel %vm790_vm5, %v779_v52, %v1922_v46 }
  0xe0   : > { %v813_v27 = vsel %vm807_vm6, %v796_v54, %v1950_v61 }
  0xe1   : > { %v715_v8 = vpop.permute.xlu1 %714  ;;  %v573_v9 = vpop.permute.xlu0 %572 }
  0xe2   : > { %v879_v5 = vsel %vm875_vm10, %v862_v7, %v715_v8  ;;  %v829_v25 = vsel %vm824_vm7, %v812_v1, %v573_v9  ;;  %v357_v7 = vrot.slane %v236_v56, 2 }
  0xe3   : > { %540 = vrot.lane.b32.xlu1 %v302_v59, %s1524_s24  ;;  %494 = vrot.lane.b32.xlu0 %v1925_v2, %s1521_s17 }
  0xe4   : > { %1315 = vmatmul.mubr.msk.f32.gmra.mxu0 %vm897_vm11, %v879_v5  ;;  %v358_v5 = vsel %vm305_vm0, %v355_v60, %v357_v7 }
  0xe5   : > { %v1972_v10 = vpop.permute.xlu1 %432  ;;  %v1974_v14 = vpop.permute.xlu0 %386 }
  0xe7   : > { %728 = vrot.lane.b32.xlu1 %v343_v11, %s1528_s5  ;;  %682 = vrot.lane.b32.xlu0 %v304_v13, %s1527_s28 }
  0xe9   : > { %v621_v17 = vpop.permute.xlu1 %620  ;;  %v575_v18 = vpop.permute.xlu0 %574 }
  0xea   : > { %v846_v6 = vsel %vm841_vm8, %v829_v25, %v621_v17  ;;  %v830_v24 = vsel %vm824_vm7, %v813_v27, %v575_v18  ;;  %v237_v17 = vld [vmem:[%s1626_s8 + $0xd8] sm:$0xff]  ;;  %v239_v18 = vld [vmem:[%s1626_s8 + $0xe8] sm:$0x3]  ;;  %s1276_s8 = sshll.u32 %s1507_s13, 1 }
  0xeb   : > { %542 = vrot.lane.b32.xlu1 %v304_v13, %s1524_s24  ;;  %400 = vrot.lane.b32.xlu0 %v302_v59, %s1523_s21  ;;  %v354_v59 = vrot.slane %v234_v35, 2  ;;  %v370_v23 = vrot.slane %v239_v18, 2 }
  0xed   : > { %v1981_v20 = vpop.permute.xlu1 %480  ;;  %v1983_v22 = vpop.permute.xlu0 %434  ;;  %v356_v61 = vsel %vm305_vm0, %v354_v59, %v355_v60 }
  0xef   : > { %730 = vrot.lane.b32.xlu1 %v345_v19, %s1528_s5  ;;  %588 = vrot.lane.b32.xlu0 %v343_v11, %s1525_s25 }
  0xf1   : > { %v669_v26 = vpop.permute.xlu1 %668  ;;  %v623_v28 = vpop.permute.xlu0 %622 }
  0xf2   : > { %v863_v31 = vsel %vm858_vm9, %v846_v6, %v669_v26  ;;  %v847_v32 = vsel %vm841_vm8, %v830_v24, %v623_v28  ;;  %v362_v26 = vrot.slane %v237_v17, 1  ;;  %v365_v28 = vrot.slane %v239_v18, 1 }
  0xf3   : > { %448 = vrot.lane.b32.xlu1 %v343_v11, %s1522_s18  ;;  %402 = vrot.lane.b32.xlu0 %v304_v13, %s1523_s21 }
  0xf5   : > { %v1997_v37 = vpop.permute.xlu1 %528  ;;  %v1999_v38 = vpop.permute.xlu0 %482 }
  0xf7   : > { %636 = vrot.lane.b32.xlu1 %v234_v35, %s1526_s29  ;;  %590 = vrot.lane.b32.xlu0 %v345_v19, %s1525_s25 }
  0xf9   : > { %v717_v33 = vpop.permute.xlu1 %716  ;;  %v671_v39 = vpop.permute.xlu0 %670 }
  0xfa   : > { %v880_v51 = vsel %vm875_vm10, %v863_v31, %v717_v33  ;;  %v864_v46 = vsel %vm858_vm9, %v847_v32, %v671_v39  ;;  %v371_v39 = vsel %vm305_vm0, %v368_v36, %v370_v23 }
  0xfb   : > { %496 = vrot.lane.b32.xlu1 %v234_v35, %s1521_s17  ;;  %450 = vrot.lane.b32.xlu0 %v345_v19, %s1522_s18  ;;  %v363_v19 = vrot.slane %v238_v16, 1  ;;  %v763_v35 = vsel %vm756_vm3, %v1719_v44, %v1952_v3  ;;  %s192_s18 = scalar_lea.vmem [#allocation2], %s1255_s7 }
  0xfc   : > { %1317 = vmatprep.mubr.msk.f32.mxu0 %vm897_vm11, %v880_v51  ;;  %v780_v1 = vsel %vm773_vm4, %v763_v35, %v1972_v10  ;;  %s1146_s21 = sshll.u32 %s192_s18, 4  ;;  %s2180_s21 = int_to_ptr.vmem [resolvable:$true] %s1146_s21 }
  0xfd   : > { %v2021_v48 = vpop.permute.xlu1 %530  ;;  %v2023_v55 = vpop.permute.xlu0 %388  ;;  %v366_v25 = vsel %vm264_vm1, %v363_v19, %v365_v28  ;;  %v364_v6 = vsel %vm264_vm1, %v362_v26, %v363_v19  ;;  %v797_v21 = vsel %vm790_vm5, %v780_v1, %v1981_v20  ;;  %s1427_s3 = scalar_lea.vmem %s2180_s21, 128 }
  0xfe   : > { %v814_v44 = vsel %vm807_vm6, %v797_v21, %v1997_v37  ;;  %v764_v37 = vsel %vm756_vm3, %v1722_v45, %v1974_v14  ;;  %v765_v7 = vsel %vm756_vm3, %v1754_v57, %v2023_v55  ;;  %p1428_p0 = scmp.ne.s32.totalorder %s2180_s21, %s1427_s3 }
  0xff   : > { %684 = vrot.lane.b32.xlu1 %v351_v53, %s1527_s28  ;;  %638 = vrot.lane.b32.xlu0 %v235_v42, %s1526_s29  ;;  %v781_v54 = vsel %vm773_vm4, %v764_v37, %v1983_v22 }
 0x100   : > { %v798_v56 = vsel %vm790_vm5, %v781_v54, %v1999_v38  ;;  %p1429_p1 = pnand %p1428_p0, %p1596_p3 }
 0x101   : > { %v719_v34 = vpop.permute.xlu1 %718  ;;  %v577_v62 = vpop.permute.xlu0 %576  ;;  %v815_v32 = vsel %vm807_vm6, %v798_v56, %v2021_v48 }
 0x102   : > { %v881_v40 = vsel %vm875_vm10, %v864_v46, %v719_v34  ;;  %v831_v3 = vsel %vm824_vm7, %v814_v44, %v577_v62  ;;  %p1430_p2 = pneg %p1429_p1 }
 0x103   : > { %544 = vrot.lane.b32.xlu1 %v351_v53, %s1524_s24  ;;  %498 = vrot.lane.b32.xlu0 %v235_v42, %s1521_s17  ;;  %v367_v42 = vrot.slane %v237_v17, 2  ;;  %s1142_s17 = sadd.s32 %s1503_s12, %s1276_s8  ;;  %s1529_s12 = smov [#allocation2]  }
 0x104   : > { %1318 = vmatmul.mubr.msk.f32.gmra.mxu0 %vm897_vm11, %v881_v40  ;;  %s1431_s13 = sshll.u32 %s1529_s12, 4  ;;  %s1432_s13 = int_to_ptr.vmem [resolvable:$false] %s1431_s13 }
 0x105   : > { %v2039_v49 = vpop.permute.xlu1 %436  ;;  %v2041_v4 = vpop.permute.xlu0 %390  ;;  %v369_v51 = vsel %vm305_vm0, %v367_v42, %v368_v36  ;;  %s1433_s4 = scalar_lea.vmem %s1432_s13, 256  ;;  %p1434_p4 = scmp.lt.s32.totalorder %s2180_s21, %s1432_s13 }
 0x106   : > { %v766_v57 = vsel %vm756_vm3, %v1757_v58, %v2041_v4  ;;  %p1435_p5 = scmp.lt.s32.totalorder %s1433_s4, %s1427_s3 }
 0x107   : > { %732 = vrot.lane.b32.xlu1 %v356_v61, %s1528_s5  ;;  %686 = vrot.lane.b32.xlu0 %v353_v63, %s1527_s28 }
 0x108   : > { %p1436_p6 = por %p1435_p5, %p1434_p4 }
 0x109   : > { %v625_v8 = vpop.permute.xlu1 %624  ;;  %v579_v9 = vpop.permute.xlu0 %578 }
 0x10a   : > { %v848_v10 = vsel %vm841_vm8, %v831_v3, %v625_v8  ;;  %v832_v59 = vsel %vm824_vm7, %v815_v32, %v579_v9  ;;  %v782_v8 = vsel %vm773_vm4, %v765_v7, %v2039_v49  ;;  %p1437_p7 = pnand %p1436_p6, %p1430_p2 }
 0x10b   : > { %592 = vrot.lane.b32.xlu1 %v356_v61, %s1525_s25  ;;  %546 = vrot.lane.b32.xlu0 %v353_v63, %s1524_s24  ;;  %s1277_s24 = sshll.u32 %s1142_s17, 7 }
 0x10d   : > { %v485_v11 = vpop.permute.xlu1 %484  ;;  %v2048_v13 = vpop.permute.xlu0 %438 }
 0x10e   : > { %v799_v9 = vsel %vm790_vm5, %v782_v8, %v485_v11  ;;  %v783_v55 = vsel %vm773_vm4, %v766_v57, %v2048_v13 }
 0x10f   : > { %594 = vrot.lane.b32.xlu1 %v358_v5, %s1525_s25  ;;  %734 = vrot.lane.b32.xlu0 %v358_v5, %s1528_s5 }
 0x111   : > { %v673_v29 = vpop.permute.xlu1 %672  ;;  %v627_v30 = vpop.permute.xlu0 %626 }
 0x112   : > { %v865_v43 = vsel %vm858_vm9, %v848_v10, %v673_v29  ;;  %v849_v45 = vsel %vm841_vm8, %v832_v59, %v627_v30 }
 0x113   : > { %642 = vrot.lane.b32.xlu1 %v238_v16, %s1526_s29  ;;  %640 = vrot.lane.b32.xlu0 %v237_v17, %s1526_s29  ;;  %s1144_s29 = scalar_lea.hbm %s2231_s2, %s1277_s24 }
 0x115   : > { %v533_v31 = vpop.permute.xlu1 %532  ;;  %v487_v33 = vpop.permute.xlu0 %486 }
 0x116   : > { %v816_v17 = vsel %vm807_vm6, %v799_v9, %v533_v31  ;;  %v800_v49 = vsel %vm790_vm5, %v783_v55, %v487_v33 }
 0x117   : > { %690 = vrot.lane.b32.xlu1 %v366_v25, %s1527_s28  ;;  %688 = vrot.lane.b32.xlu0 %v364_v6, %s1527_s28 }
 0x119   : > { %v721_v20 = vpop.permute.xlu1 %720  ;;  %v675_v52 = vpop.permute.xlu0 %674 }
 0x11a   : > { %v882_v53 = vsel %vm875_vm10, %v865_v43, %v721_v20  ;;  %v866_v14 = vsel %vm858_vm9, %v849_v45, %v675_v52 }
 0x11b   : > { %738 = vrot.lane.b32.xlu1 %v371_v39, %s1528_s5  ;;  %736 = vrot.lane.b32.xlu0 %v369_v51, %s1528_s5 }
 0x11c   : > { %1320 = vmatprep.mubr.msk.f32.mxu0 %vm897_vm11, %v882_v53 }
 0x11d   : > { %v535_v27 = vpop.permute.xlu1 %534  ;;  %v393_v24 = vpop.permute.xlu0 %392 }
 0x11e   : > { %v817_v36 = vsel %vm807_vm6, %v800_v49, %v535_v27  ;;  %v767_v39 = vsel %vm756_vm3, %v1791_v12, %v393_v24 }
 0x121   : > { %v723_v60 = vpop.permute.xlu1 %722  ;;  %v581_v0 = vpop.permute.xlu0 %580 }
 0x122   : > { %v883_v22 = vsel %vm875_vm10, %v866_v14, %v723_v60  ;;  %v833_v18 = vsel %vm824_vm7, %v816_v17, %v581_v0 }
 0x123   : > { %1321 = vmatmul.mubr.msk.f32.gmra.mxu0 %vm897_vm11, %v883_v22 }
 0x125   : > { %v441_v46 = vpop.permute.xlu1 %440  ;;  %v395_v34 = vpop.permute.xlu0 %394 }
 0x126   : > { %v784_v51 = vsel %vm773_vm4, %v767_v39, %v441_v46  ;;  %v768_v12 = vsel %vm756_vm3, %v1794_v15, %v395_v34 }
 0x129   : > { %v629_v38 = vpop.permute.xlu1 %628  ;;  %v583_v62 = vpop.permute.xlu0 %582 }
 0x12a   : > { %v850_v19 = vsel %vm841_vm8, %v833_v18, %v629_v38  ;;  %v834_v42 = vsel %vm824_vm7, %v817_v36, %v583_v62 }
 0x12d   : > { %v489_v40 = vpop.permute.xlu1 %488  ;;  %v443_v61 = vpop.permute.xlu0 %442 }
 0x12e   : > { %v801_v43 = vsel %vm790_vm5, %v784_v51, %v489_v40  ;;  %v785_v24 = vsel %vm773_vm4, %v768_v12, %v443_v61 }
 0x131   : > { %v677_v63 = vpop.permute.xlu1 %676  ;;  %v631_v48 = vpop.permute.xlu0 %630 }
 0x132   : > { %v867_v26 = vsel %vm858_vm9, %v850_v19, %v677_v63  ;;  %v851_v1 = vsel %vm841_vm8, %v834_v42, %v631_v48 }
 0x135   : > { %v537_v5 = vpop.permute.xlu1 %536  ;;  %v491_v16 = vpop.permute.xlu0 %490 }
 0x136   : > { %v818_v53 = vsel %vm807_vm6, %v801_v43, %v537_v5  ;;  %v802_v45 = vsel %vm790_vm5, %v785_v24, %v491_v16 }
 0x139   : > { %v725_v28 = vpop.permute.xlu1 %724  ;;  %v679_v29 = vpop.permute.xlu0 %678 }
 0x13a   : > { %v884_v30 = vsel %vm875_vm10, %v867_v26, %v725_v28  ;;  %v868_v25 = vsel %vm858_vm9, %v851_v1, %v679_v29 }
 0x13b   : > { %1323 = vmatprep.mubr.msk.f32.mxu1 %vm897_vm11, %v884_v30 }
 0x13d   : > { %v539_v11 = vpop.permute.xlu1 %538  ;;  %v397_v35 = vpop.permute.xlu0 %396 }
 0x13e   : > { %v819_v0 = vsel %vm807_vm6, %v802_v45, %v539_v11  ;;  %v769_v16 = vsel %vm756_vm3, %v1841_v47, %v397_v35 }
 0x141   : > { %v727_v6 = vpop.permute.xlu1 %726  ;;  %v585_v23 = vpop.permute.xlu0 %584 }
 0x142   : > { %v885_v58 = vsel %vm875_vm10, %v868_v25, %v727_v6  ;;  %v835_v37 = vsel %vm824_vm7, %v818_v53, %v585_v23 }
 0x143   : > { %1324 = vmatmul.mubr.msk.f32.vlgmr.msra.gmra.mxu1 %vm897_vm11, %v885_v58 }
 0x145   : > { %v445_v4 = vpop.permute.xlu1 %444  ;;  %v399_v13 = vpop.permute.xlu0 %398 }
 0x146   : > { %v786_v17 = vsel %vm773_vm4, %v769_v16, %v445_v4  ;;  %v770_v47 = vsel %vm756_vm3, %v1849_v50, %v399_v13 }
 0x149   : > { %v633_v21 = vpop.permute.xlu1 %632  ;;  %v587_v31 = vpop.permute.xlu0 %586 }
 0x14a   : > { %v852_v54 = vsel %vm841_vm8, %v835_v37, %v633_v21  ;;  %v836_v22 = vsel %vm824_vm7, %v819_v0, %v587_v31 }
 0x14d   : > { %v493_v33 = vpop.permute.xlu1 %492  ;;  %v447_v44 = vpop.permute.xlu0 %446 }
 0x14e   : > { %v803_v18 = vsel %vm790_vm5, %v786_v17, %v493_v33  ;;  %v787_v35 = vsel %vm773_vm4, %v770_v47, %v447_v44 }
 0x151   : > { %v681_v3 = vpop.permute.xlu1 %680  ;;  %v635_v10 = vpop.permute.xlu0 %634 }
 0x152   : > { %v869_v56 = vsel %vm858_vm9, %v852_v54, %v681_v3  ;;  %v853_v46 = vsel %vm841_vm8, %v836_v22, %v635_v10 }
 0x155   : > { %v541_v20 = vpop.permute.xlu1 %540  ;;  %v495_v52 = vpop.permute.xlu0 %494 }
 0x156   : > { %v820_v28 = vsel %vm807_vm6, %v803_v18, %v541_v20  ;;  %v804_v36 = vsel %vm790_vm5, %v787_v35, %v495_v52 }
 0x159   : > { %v729_v27 = vpop.permute.xlu1 %728  ;;  %v683_v32 = vpop.permute.xlu0 %682 }
 0x15a   : > { %v886_v59 = vsel %vm875_vm10, %v869_v56, %v729_v27  ;;  %v870_v38 = vsel %vm858_vm9, %v853_v46, %v683_v32 }
 0x15b   : > { %1326 = vmatprep.mubr.msk.f32.mxu1 %vm897_vm11, %v886_v59 }
 0x15d   : > { %v543_v14 = vpop.permute.xlu1 %542  ;;  %v401_v60 = vpop.permute.xlu0 %400 }
 0x15e   : > { %v821_v25 = vsel %vm807_vm6, %v804_v36, %v543_v14  ;;  %v771_v3 = vsel %vm756_vm3, %v1916_v41, %v401_v60 }
 0x161   : > { %v731_v62 = vpop.permute.xlu1 %730  ;;  %v589_v40 = vpop.permute.xlu0 %588 }
 0x162   : > { %v887_v15 = vsel %vm875_vm10, %v870_v38, %v731_v62  ;;  %v837_v29 = vsel %vm824_vm7, %v820_v28, %v589_v40 }
 0x163   : > { %1327 = vmatmul.mubr.msk.f32.gmra.mxu1 %vm897_vm11, %v887_v15 }
 0x165   : > { %v449_v34 = vpop.permute.xlu1 %448  ;;  %v403_v61 = vpop.permute.xlu0 %402 }
 0x166   : > { %v772_v10 = vsel %vm756_vm3, %v1925_v2, %v403_v61  ;;  %v788_v39 = vsel %vm773_vm4, %v771_v3, %v449_v34 }
 0x169   : > { %v637_v63 = vpop.permute.xlu1 %636  ;;  %v591_v48 = vpop.permute.xlu0 %590 }
 0x16a   : > { %v854_v30 = vsel %vm841_vm8, %v837_v29, %v637_v63  ;;  %v838_v6 = vsel %vm824_vm7, %v821_v25, %v591_v48 }
 0x16d   : > { %v497_v7 = vpop.permute.xlu1 %496  ;;  %v451_v8 = vpop.permute.xlu0 %450 }
 0x16e   : > { %v789_v51 = vsel %vm773_vm4, %v772_v10, %v451_v8  ;;  %v805_v43 = vsel %vm790_vm5, %v788_v39, %v497_v7 }
 0x171   : > { %v685_v9 = vpop.permute.xlu1 %684  ;;  %v639_v5 = vpop.permute.xlu0 %638 }
 0x172   : > { %v871_v57 = vsel %vm858_vm9, %v854_v30, %v685_v9  ;;  %v855_v23 = vsel %vm841_vm8, %v838_v6, %v639_v5 }
 0x175   : > { %v545_v19 = vpop.permute.xlu1 %544  ;;  %v499_v26 = vpop.permute.xlu0 %498 }
 0x176   : > { %v806_v20 = vsel %vm790_vm5, %v789_v51, %v499_v26  ;;  %v822_v37 = vsel %vm807_vm6, %v805_v43, %v545_v19 }
 0x179   : > { %v733_v55 = vpop.permute.xlu1 %732  ;;  %v687_v49 = vpop.permute.xlu0 %686 }
 0x17a   : > { %v888_v11 = vsel %vm875_vm10, %v871_v57, %v733_v55  ;;  %v872_v58 = vsel %vm858_vm9, %v855_v23, %v687_v49 }
 0x17b   : > { %1329 = vmatprep.mubr.msk.f32.mxu1 %vm897_vm11, %v888_v11 }
 0x17d   : > { %v593_v42 = vpop.permute.xlu1 %592  ;;  %v547_v1 = vpop.permute.xlu0 %546 }
 0x17e   : > { %v823_v54 = vsel %vm807_vm6, %v806_v20, %v547_v1  ;;  %v839_v41 = vsel %vm824_vm7, %v822_v37, %v593_v42 }
 0x181   : > { %v595_v4 = vpop.permute.xlu1 %594  ;;  %v735_v21 = vpop.permute.xlu0 %734 }
 0x182   : > { %v889_v50 = vsel %vm875_vm10, %v872_v58, %v735_v21  ;;  %v840_v56 = vsel %vm824_vm7, %v823_v54, %v595_v4 }
 0x183   : > { %1330 = vmatmul.mubr.msk.f32.gmra.mxu1 %vm897_vm11, %v889_v50 }
 0x184   : > { %v1313_v13 = vpop.f32.mrf.mxu0 }
 0x185   : > { %v643_v31 = vpop.permute.xlu1 %642  ;;  %v641_v33 = vpop.permute.xlu0 %640 }
 0x186   : > { %v1016_v44 = vpop.f32.mrf.mxu0  ;;  %v857_v2 = vsel %vm841_vm8, %v840_v56, %v643_v31  ;;  %v856_v27 = vsel %vm841_vm8, %v839_v41, %v641_v33 }
 0x187   : > { %1095 = vxpose.xlu0.b32.start [1/16] (narrow) %v1016_v44, 8 }
 0x189   : > { %v691_v52 = vpop.permute.xlu1 %690  ;;  %v689_v53 = vpop.permute.xlu0 %688 }
 0x18a   : > { %v874_v32 = vsel %vm858_vm9, %v857_v2, %v691_v52  ;;  %v873_v59 = vsel %vm858_vm9, %v856_v27, %v689_v53 }
 0x18b   : > { %1096 = vxpose.xlu0.b32.cont [2/16] (narrow) %v1313_v13, 8 }
 0x18d   : > { %v739_v12 = vpop.permute.xlu1 %738  ;;  %v737_v24 = vpop.permute.xlu0 %736 }
 0x18e   : > { %v891_v45 = vsel %vm875_vm10, %v874_v32, %v739_v12  ;;  %v890_v14 = vsel %vm875_vm10, %v873_v59, %v737_v24 }
 0x18f   : > { %1332 = vmatprep.mubr.msk.f32.mxu1 %vm897_vm11, %v890_v14 }
 0x190   : > { %1333 = vmatmul.mubr.msk.f32.gmra.mxu1 %vm897_vm11, %v891_v45 }
 0x1a4   : > { %v1316_v60 = vpop.f32.mrf.mxu0 }
 0x1a6   : > { %v1026_v0 = vpop.f32.mrf.mxu0 }
 0x1a7   : > { %1097 = vxpose.xlu0.b32.cont [3/16] (narrow) %v1026_v0, 8 }
 0x1ab   : > { %1098 = vxpose.xlu0.b32.cont [4/16] (narrow) %v1316_v60, 8 }
 0x1c4   : > { %v1319_v22 = vpop.f32.mrf.mxu0 }
 0x1c6   : > { %v1036_v46 = vpop.f32.mrf.mxu0 }
 0x1c7   : > { %1099 = vxpose.xlu0.b32.cont [5/16] (narrow) %v1036_v46, 8 }
 0x1cb   : > { %1100 = vxpose.xlu0.b32.cont [6/16] (narrow) %v1319_v22, 8 }
 0x1e3   : > { %v1322_v38 = vpop.f32.mrf.mxu0 }
 0x1e5   : > { %v1046_v62 = vpop.f32.mrf.mxu0 }
 0x1e6   : > { %1101 = vxpose.xlu0.b32.cont [7/16] (narrow) %v1046_v62, 8 }
 0x1ea   : > { %1102 = vxpose.xlu0.b32.cont [8/16] (narrow) %v1322_v38, 8 }
 0x203   : > { %v1325_v40 = vpop.f32.mrf.mxu1 }
 0x205   : > { %v1056_v15 = vpop.f32.mrf.mxu1 }
 0x206   : > { %1103 = vxpose.xlu0.b32.cont [9/16] (narrow) %v1056_v15, 8 }
 0x20a   : > { %1104 = vxpose.xlu0.b32.cont [10/16] (narrow) %v1325_v40, 8 }
 0x223   : > { %v1328_v34 = vpop.f32.mrf.mxu1 }
 0x225   : > { %v1066_v61 = vpop.f32.mrf.mxu1 }
 0x226   : > { %1105 = vxpose.xlu0.b32.cont [11/16] (narrow) %v1066_v61, 8 }
 0x22a   : > { %1106 = vxpose.xlu0.b32.cont [12/16] (narrow) %v1328_v34, 8 }
 0x243   : > { %v1331_v63 = vpop.f32.mrf.mxu1 }
 0x245   : > { %v1076_v48 = vpop.f32.mrf.mxu1 }
 0x246   : > { %1107 = vxpose.xlu0.b32.cont [13/16] (narrow) %v1076_v48, 8 }
 0x24a   : > { %1108 = vxpose.xlu0.b32.cont [14/16] (narrow) %v1331_v63, 8 }
 0x250   : > { %v1334_v7 = vpop.f32.mrf.mxu1 }
 0x252   : > { %v1086_v8 = vpop.f32.mrf.mxu1 }
 0x253   : > { %1109 = vxpose.xlu0.b32.cont [15/16] (narrow) %v1086_v8, 8 }
 0x257   : > { %1110 = vxpose.xlu0.b32.end [16/16] (narrow) %v1334_v7, 8 }
 0x297   : > { %v1111_v9 = vpop.trf.xlu0 }
 0x298   : > { %1127 = vst [vmem:[%s192_s18] sm:$0xff] %v1111_v9 }
 0x299   : > { %1440 = shalt.err (!%p1437_p7)
}
 0x29a   : > { %s1441_s28 = scalar_lea.hbm %s1144_s29, 128  ;;  %s1445_s7 = scalar_lea.hbm %s2231_s2, 512 }
 0x29b   : > { %p1442_p9 = scmp.ne.s32.totalorder %s1144_s29, %s1441_s28  ;;  %p1446_p12 = scmp.lt.s32.totalorder %s1144_s29, %s2231_s2 }
 0x29c   : > { %p1447_p13 = scmp.lt.s32.totalorder %s1445_s7, %s1441_s28 }
 0x29d   : > { %p1443_p10 = pnand %p1442_p9, %p1596_p3 }
 0x29e   : > { %p1448_p0 = por %p1447_p13, %p1446_p12 }
 0x29f   : > { %p1444_p11 = pneg %p1443_p10 }
 0x2a1   : > { %p1449_p1 = pnand %p1448_p0, %p1444_p11 }
 0x2a3   : > { %1452 = shalt.err (!%p1449_p1)
}
 0x2a4   : > { %1348 = dma.vmem_to_hbm [thread:$0]  (%p1596_p3), %s2180_s21, 128, %s1144_s29, %s1129_s30  }
 0x2a5 PF: > { %p1354_p2 = scmp.ge.s32.totalorder %s1519_s16, 2  ;;  %s1158_s18 = sand.u32 1, %s1491_s9  }
 0x2a6   : > { %s1159_s24 = scalar_lea.sflag [#allocation3], %s1158_s18 }
 0x2a7   : > { %p1351_p4 = pnand %p1354_p2, %p1605_p8 }
 0x2a9   : > { %p1352_p5 = pneg %p1351_p4 }
 0x2ab   : > { %1486 = dma.done.wait (%p1352_p5), %s1159_s24, 128  }
 0x2ac   : > { %1488 = vsyncadd (%p1352_p5), %s1159_s24, 4294967168  ;;  %s15_s16 = sadd.s32 1, %s1519_s16   ;;  %s2234_s9 = smov %s1495_s10 }
 0x2ad   : > { %p12_p6 = scmp.ge.s32.totalorder %s15_s16, 6   ;;  %s2235_s10 = smov %s1499_s11 }
 0x2ae   : > { %s2236_s11 = smov %s1614_s27  ;;  %s2237_s12 = smov %s1511_s14 }
 0x2af   : > { %s2238_s13 = smov %s1515_s15  ;;  %s2239_s14 = smov %s2242_s19 }
 0x2b0   : > { %s2240_s15 = smov %s2246_s20  ;;  %14 = sbr.rel (!%p12_p6) target bundleno = 5 (0x5), region = 66 }
 0x2b5   :  { %1164 = vsyncpa [#allocation3], 1 }
 0x2b6   :  { %1166 = vsyncpa [#allocation3 + $0x1], 1 }

</bundles_post_ra>
